<compile_context>
chip_gen: v7x
topology: tpu7x:2x2x1
jax: 0.10.0
libtpu: 0.0.40
codegen_flags: <defaults>
</compile_context>

<pallas_src>
import jax
import jax.numpy as jnp
from jax import lax
from jax.experimental import pallas as pl
from jax.experimental.pallas import tpu as pltpu


def _round_up(x, m):
    return ((x + m - 1) // m) * m


def _pad_gate_cols(m, H, H_pad):
    """(..., 4H) -> (..., 4*H_pad): zero-pad each of the 4 gate column groups."""
    if H == H_pad:
        return m
    parts = jnp.split(m, 4, axis=-1)
    pad = [(0, 0)] * (m.ndim - 1) + [(0, H_pad - H)]
    return jnp.concatenate([jnp.pad(p, pad) for p in parts], axis=-1)


def input_proj_kernel(x_ref, w_ref, b_ref, gx_ref):
    """gates_x block: (Tm, D)bf16 @ (D, G)bf16 + (1, G)f32 -> (Tm, G)f32."""
    gx_ref[...] = (
        jnp.dot(x_ref[...], w_ref[...], preferred_element_type=jnp.float32)
        + b_ref[...]
    )


def lstm_recurrence_kernel(gx_ref, w_hh_ref, out_ref, h_ref, c_ref):
    """One time-slab of the LSTM recurrence.

    gx_ref:   (Tt, Bp, 4*Hp) f32   precomputed x-projection + bias
    w_hh_ref: (Hp, 4*Hp)     bf16  hidden->hidden weights (pre-transposed, resident)
    out_ref:  (Tt, Bp, Hp)         output slab for this time block
    h_ref/c_ref: (Bp, Hp)    f32   persistent hidden/cell state (VMEM scratch)
    """
    Hp = h_ref.shape[1]
    Tt = gx_ref.shape[0]

    @pl.when(pl.program_id(0) == 0)
    def _():
        h_ref[...] = jnp.zeros_like(h_ref)
        c_ref[...] = jnp.zeros_like(c_ref)

    w_hh = w_hh_ref[...]  # hoisted out of the unrolled loop

    def step(tt, carry):
        h, c = carry  # (Bp, Hp) f32
        gates = (
            jnp.dot(h.astype(jnp.bfloat16), w_hh,
                    preferred_element_type=jnp.float32)
            + gx_ref[tt]
        )  # (Bp, 4*Hp) f32, lane-aligned gate groups
        i_g = jax.nn.sigmoid(gates[:, 0:Hp])
        f_g = jax.nn.sigmoid(gates[:, Hp:2 * Hp])
        g_g = jnp.tanh(gates[:, 2 * Hp:3 * Hp])
        o_g = jax.nn.sigmoid(gates[:, 3 * Hp:4 * Hp])
        c_new = f_g * c + i_g * g_g
        h_new = o_g * jnp.tanh(c_new)
        out_ref[tt] = h_new.astype(out_ref.dtype)
        return h_new, c_new

    h_fin, c_fin = lax.fori_loop(0, Tt, step, (h_ref[...], c_ref[...]),
                                 unroll=True)
    h_ref[...] = h_fin
    c_ref[...] = c_fin


def eb_unit_forward(x, w_ih, w_hh, b_ih, b_hh, droprate=0.0, time_block=16):
    """EBUnit.forward: out, _ = LSTM(x); dropout is identity in eval mode."""
    S, B, D = x.shape
    H4 = w_ih.shape[0]
    H = H4 // 4

    Hp = _round_up(max(H, 1), 128)       # lane-aligned hidden size
    G = 4 * Hp                           # padded gate width
    Bp = _round_up(max(B, 1), 16)        # bf16 sublane-friendly batch
    Tt = min(time_block, S)              # timesteps per grid step
    Sp = _round_up(S, Tt)

    # ---- parameter prep (plain-JAX glue) -------------------------------
    w_ih_t = _pad_gate_cols(jnp.asarray(w_ih, jnp.float32).T, H, Hp)      # (D, G)
    w_ih_t = w_ih_t.astype(jnp.bfloat16)
    w_hh_t = _pad_gate_cols(jnp.asarray(w_hh, jnp.float32).T, H, Hp)      # (H, G)
    w_hh_t = jnp.pad(w_hh_t, ((0, Hp - H), (0, 0))).astype(jnp.bfloat16)  # (Hp, G)
    b = _pad_gate_cols(
        (jnp.asarray(b_ih, jnp.float32) + jnp.asarray(b_hh, jnp.float32))[None, :],
        H, Hp)                                                            # (1, G)

    x_p = jnp.pad(x, ((0, Sp - S), (0, Bp - B), (0, 0)))
    x2d = x_p.reshape(Sp * Bp, D).astype(jnp.bfloat16)

    Tm = Tt * Bp  # rows of x per time-slab

    # ---- Pass 1: parallel input projection (no serial dependence) ------
    gx2d = pl.pallas_call(
        input_proj_kernel,
        out_shape=jax.ShapeDtypeStruct((Sp * Bp, G), jnp.float32),
        grid_spec=pltpu.PrefetchScalarGridSpec(
            num_scalar_prefetch=0,
            grid=(Sp // Tt,),
            in_specs=[
                pl.BlockSpec((Tm, D), lambda t: (t, 0)),   # x rows
                pl.BlockSpec((D, G), lambda t: (0, 0)),    # W_ih^T (resident)
                pl.BlockSpec((1, G), lambda t: (0, 0)),    # bias   (resident)
            ],
            out_specs=pl.BlockSpec((Tm, G), lambda t: (t, 0)),
        ),
        compiler_params=pltpu.CompilerParams(
            dimension_semantics=("parallel",),
        ),
    )(x2d, w_ih_t, b)
    gates_x = gx2d.reshape(Sp, Bp, G)

    # ---- Pass 2: time-blocked serial recurrence -------------------------
    out_itemsize = jnp.dtype(x.dtype).itemsize
    vmem_needed = (
        2 * Tt * Bp * G * 4            # gates_x slab (f32, double-buffered)
        + 2 * Hp * G * 2               # W_hh^T (bf16, default double-buffered)
        + 2 * Tt * Bp * Hp * out_itemsize  # output slab
        + 2 * Bp * Hp * 4              # h/c scratch
    )
    vmem_limit = int(min(max(2 * vmem_needed, 16 * 2**20), 64 * 2**20))

    out_full = pl.pallas_call(
        lstm_recurrence_kernel,
        out_shape=jax.ShapeDtypeStruct((Sp, Bp, Hp), x.dtype),
        grid_spec=pltpu.PrefetchScalarGridSpec(
            num_scalar_prefetch=0,
            grid=(Sp // Tt,),
            in_specs=[
                pl.BlockSpec((Tt, Bp, G), lambda t: (t, 0, 0)),  # gates_x slab
                pl.BlockSpec((Hp, G), lambda t: (0, 0)),         # W_hh^T (resident)
            ],
            out_specs=pl.BlockSpec((Tt, Bp, Hp), lambda t: (t, 0, 0)),
            scratch_shapes=[
                pltpu.VMEM((Bp, Hp), jnp.float32),   # h state
                pltpu.VMEM((Bp, Hp), jnp.float32),   # c state
            ],
        ),
        compiler_params=pltpu.CompilerParams(
            dimension_semantics=("arbitrary",),      # recurrence: strictly sequential
            vmem_limit_bytes=vmem_limit,
        ),
    )(gates_x, w_hh_t)

    out = out_full[:S, :B, :H]
    # TODO(synk): training-mode dropout (p=droprate) omitted; eval-mode identity.
    return out


def lstm_reference(x, w_ih, w_hh, b_ih, b_hh):
    """Pure-JAX f32 reference matching nn.LSTM (single layer, zero init state)."""
    S, B, D = x.shape
    H = w_hh.shape[1]
    b = b_ih + b_hh

    def step(carry, x_t):
        h, c = carry
        gates = x_t @ w_ih.T + h @ w_hh.T + b
        i = jax.nn.sigmoid(gates[:, 0:H])
        f = jax.nn.sigmoid(gates[:, H:2 * H])
        g = jnp.tanh(gates[:, 2 * H:3 * H])
        o = jax.nn.sigmoid(gates[:, 3 * H:4 * H])
        c = f * c + i * g
        h = o * jnp.tanh(c)
        return (h, c), h

    init = (jnp.zeros((B, H), jnp.float32), jnp.zeros((B, H), jnp.float32))
    _, out = lax.scan(step, init, x.astype(jnp.float32))
    return out


if __name__ == "__main__":
    # Small shapes consistent with EBUnit.forward: x is (seq_len, batch, input_dim).
    S, B, D, H = 8, 2, 32, 32

    key = jax.random.PRNGKey(0)
    kx, k1, k2, k3, k4 = jax.random.split(key, 5)

    # Deterministic nn.LSTM-style uniform(-1/sqrt(H), 1/sqrt(H)) init.
    bound = 1.0 / jnp.sqrt(jnp.float32(H))
    w_ih = jax.random.uniform(k1, (4 * H, D), jnp.float32, -bound, bound)
    w_hh = jax.random.uniform(k2, (4 * H, H), jnp.float32, -bound, bound)
    b_ih = jax.random.uniform(k3, (4 * H,), jnp.float32, -bound, bound)
    b_hh = jax.random.uniform(k4, (4 * H,), jnp.float32, -bound, bound)

    x = jax.random.normal(kx, (S, B, D), jnp.float32)

    out = eb_unit_forward(x, w_ih, w_hh, b_ih, b_hh, droprate=0.1)
    out = jax.block_until_ready(out)

    ref = lstm_reference(x, w_ih, w_hh, b_ih, b_hh)
    assert out.shape == (S, B, H), out.shape
    # bf16 MXU operands -> looser tolerance than a pure-f32 path.
    assert jnp.allclose(out, ref.astype(out.dtype), atol=5e-2, rtol=5e-2), (
        float(jnp.max(jnp.abs(out - ref))))

    print("KERNEL_OK")
</pallas_src>

<mosaic_0001>
module attributes {stable_mosaic.version = 11 : i64} {
  func.func @input_proj_kernel(%arg0: i32, %arg1: memref<128x32xbf16, #tpu.memory_space<vmem>>, %arg2: memref<32x512xbf16, #tpu.memory_space<vmem>>, %arg3: memref<1x512xf32, #tpu.memory_space<vmem>>, %arg4: memref<128x512xf32, #tpu.memory_space<vmem>>) attributes {dimension_semantics = [#tpu.dimension_semantics<parallel>], iteration_bounds = array<i64: 1>, scalar_prefetch = 0 : i64, scratch_operands = 0 : i64, tpu.core_type = #tpu.core_type<tc>, window_params = [{transform_indices = @transform_0, window_bounds = array<i64: 128, 32>}, {pipeline_mode = #tpu.pipeline_mode<synchronous>, transform_indices = @transform_1, window_bounds = array<i64: 32, 512>}, {pipeline_mode = #tpu.pipeline_mode<synchronous>, transform_indices = @transform_2, window_bounds = array<i64: 1, 512>}, {transform_indices = @transform_3, window_bounds = array<i64: 128, 512>}]} {
    %c0 = arith.constant 0 : index
    %c0_0 = arith.constant 0 : index
    %0 = vector.load %arg1[%c0, %c0_0] : memref<128x32xbf16, #tpu.memory_space<vmem>>, vector<128x32xbf16>
    %c0_1 = arith.constant 0 : index
    %c0_2 = arith.constant 0 : index
    %1 = vector.load %arg2[%c0_1, %c0_2] : memref<32x512xbf16, #tpu.memory_space<vmem>>, vector<32x512xbf16>
    %cst = arith.constant dense<0.000000e+00> : vector<128x512xf32>
    %2 = tpu.matmul %0, %1, %cst {dimension_numbers = #tpu.dot_dimension_numbers<[1], [0], [0], [1], [0, 0, 1, 1], [], []>} : vector<128x32xbf16>, vector<32x512xbf16>, vector<128x512xf32> -> vector<128x512xf32>
    %c0_3 = arith.constant 0 : index
    %c0_4 = arith.constant 0 : index
    %3 = vector.load %arg3[%c0_3, %c0_4] : memref<1x512xf32, #tpu.memory_space<vmem>>, vector<1x512xf32>
    %4 = vector.broadcast %3 : vector<1x512xf32> to vector<128x512xf32>
    %5 = arith.addf %2, %4 : vector<128x512xf32>
    %c0_5 = arith.constant 0 : index
    %c0_6 = arith.constant 0 : index
    %6 = vector.load %arg4[%c0_5, %c0_6] : memref<128x512xf32, #tpu.memory_space<vmem>>, vector<128x512xf32>
    tpu.vector_store %arg4[%c0_5, %c0_6], %5 {strides = array<i32>} : memref<128x512xf32, #tpu.memory_space<vmem>>, vector<128x512xf32>,
    return
  }
  func.func @transform_0(%arg0: i32) -> (i32, i32) {
    %c0_i32 = arith.constant 0 : i32
    %c0_i32_0 = arith.constant 0 : i32
    return %arg0, %c0_i32 : i32, i32
  }
  func.func @transform_1(%arg0: i32) -> (i32, i32) {
    %c0_i32 = arith.constant 0 : i32
    %c0_i32_0 = arith.constant 0 : i32
    %c0_i32_1 = arith.constant 0 : i32
    return %c0_i32, %c0_i32_0 : i32, i32
  }
  func.func @transform_2(%arg0: i32) -> (i32, i32) {
    %c0_i32 = arith.constant 0 : i32
    %c0_i32_0 = arith.constant 0 : i32
    %c0_i32_1 = arith.constant 0 : i32
    return %c0_i32, %c0_i32_0 : i32, i32
  }
  func.func @transform_3(%arg0: i32) -> (i32, i32) {
    %c0_i32 = arith.constant 0 : i32
    %c0_i32_0 = arith.constant 0 : i32
    return %arg0, %c0_i32 : i32, i32
  }
}

</mosaic_0001>

<bundles_post_ra>
// kernel: tpu_custom_call.1
= control target key start
LH: loop header
LB: loop body
LE: loop exit
PB: predicated region body
PF: predicated region fallthrough
CT: control target
= control target key end

     0   :  { %v553_v2 = vmov 0   ;;  %vm142_vm0 = vcmask 261120   ;;  %s728_s0 = inlined_call_operand.vmem [shape: bf16[128,32], index: 0, kind: input, shape index: {}]   ;;  %s729_s1 = inlined_call_operand.vmem [shape: bf16[32,512], index: 1, kind: input, shape index: {}]   ;;  %s730_s2 = inlined_call_operand.vmem [shape: f32[1,512], index: 2, kind: input, shape index: {}]   ;;  %s731_s3 = inlined_call_operand.hbm [shape: f32[128,512], index: 3, kind: output, shape index: {}]  }
   0x1   :  { %v509_v0 = vld [vmem:[%s729_s1 + $0x4] ss:$16 sps:$4 sm:$0xff]   ;;  %v511_v1 = vld [vmem:[%s729_s1 + $0xc] ss:$16 sps:$4 sm:$0xff]   ;;  %199 = vmatprep.mubr.bf16.mxu0 %v553_v2  ;;  %312 = vmatprep.mubr.bf16.mxu1 %v553_v2  ;;  %v513_v3 = vld [vmem:[%s729_s1] ss:$16 sps:$4 sm:$0xff]  }
   0x2   :  { %167 = vmatprep.subr.bf16.mxu0 %v509_v0  ;;  %v514_v4 = vld [vmem:[%s729_s1 + $0x8] ss:$16 sps:$4 sm:$0xff]   ;;  %280 = vmatprep.subr.bf16.mxu1 %v511_v1  ;;  %v515_v5 = vld [vmem:[%s729_s1 + $0x24] ss:$16 sps:$4 sm:$0xff]   ;;  %v517_v6 = vld [vmem:[%s729_s1 + $0x2c] ss:$16 sps:$4 sm:$0xff]  }
   0x3   :  { %168 = vmatpush1.bf16.msra.mxu0 %v513_v3  ;;  %281 = vmatpush1.bf16.msra.mxu1 %v514_v4  ;;  %v519_v7 = vld [vmem:[%s729_s1 + $0x20] ss:$16 sps:$4 sm:$0xff]   ;;  %v520_v8 = vld [vmem:[%s729_s1 + $0x28] ss:$16 sps:$4 sm:$0xff]  }
   0x4   :  { %169 = vmatprep.subr.bf16.mxu0 %v515_v5  ;;  %282 = vmatprep.subr.bf16.mxu1 %v517_v6  ;;  %v521_v9 = vld [vmem:[%s728_s0] sm:$0xff]  }
   0x7   :  { %170 = vmatpush1.bf16.msra.mxu0 %v519_v7  ;;  %283 = vmatpush1.bf16.msra.mxu1 %v520_v8 }
   0xa   :  { %489 = vmatmul.mubr.msk.bf16.vlgmr.msra.gmra.mrb[0].mxu0 %vm142_vm0, %v521_v9  ;;  %497 = vmatmul.mubr.msk.bf16.vlgmr.msra.gmra.mrb[0].mxu1 %vm142_vm0, %v521_v9 }
   0xb   :  { %209 = vmatprep.mubr.bf16.mxu0 %v553_v2  ;;  %322 = vmatprep.mubr.bf16.mxu1 %v553_v2 }
   0xc   :  { %8 = vsyncpa [#allocation3], 0  ;;  %v522_v10 = vld [vmem:[%s728_s0 + $0x8] sm:$0xff]   ;;  %v523_v11 = vld [vmem:[%s728_s0 + $0x10] sm:$0xff]   ;;  %v42_v17 = vlaneseq }
   0xd   :  { %v524_v12 = vld [vmem:[%s728_s0 + $0x18] sm:$0xff]   ;;  %v525_v13 = vld [vmem:[%s728_s0 + $0x20] sm:$0xff]   ;;  %v526_v14 = vld [vmem:[%s728_s0 + $0x28] sm:$0xff]  }
   0xe   :  { %v527_v15 = vld [vmem:[%s728_s0 + $0x30] sm:$0xff]   ;;  %v528_v16 = vld [vmem:[%s728_s0 + $0x38] sm:$0xff]   ;;  %v43_v18 = vshrl.u32 %v42_v17, 7  ;;  %v40_v21 = vld [vmem:[%s730_s2] sm:$0xf]  ;;  %s554_s0 = smov [#allocation2]  }
   0xf   :  { %s462_s2 = sshll.u32 %s554_s0, 4  ;;  %s463_s2 = int_to_ptr.vmem [resolvable:$true] %s462_s2 }
  0x10   :  { %v44_v19 = vsub.s32 0, %v43_v18  ;;  %v52_v20 = vsub.s32 2, %v43_v18  ;;  %v48_v22 = vsub.s32 1, %v43_v18  ;;  %v56_v23 = vsub.s32 3, %v43_v18  ;;  %s529_s18 = scalar_lea.vmem %s463_s2, 8192  ;;  %p534_p1 = scmp.lt.s32.totalorder %s463_s2, %s463_s2 }
  0x11   :  { %p530_p0 = scmp.ne.s32.totalorder %s463_s2, %s529_s18  ;;  %p535_p2 = scmp.lt.s32.totalorder %s529_s18, %s529_s18 }
  0x12   :  { %490 = vmatmul.mubr.msk.bf16.gmra.mrb[4].mxu0 %vm142_vm0, %v522_v10  ;;  %498 = vmatmul.mubr.msk.bf16.gmra.mrb[4].mxu1 %vm142_vm0, %v522_v10  ;;  %v644_v24 = vrot.slane %v40_v21, %v44_v19  ;;  %v646_v25 = vrot.slane %v40_v21, %v52_v20  ;;  %v648_v26 = vrot.slane %v40_v21, %v48_v22 }
  0x13   :  { %219 = vmatprep.mubr.bf16.mxu0 %v553_v2  ;;  %332 = vmatprep.mubr.bf16.mxu1 %v553_v2  ;;  %v650_v27 = vrot.slane %v40_v21, %v56_v23  ;;  %p536_p3 = por %p535_p2, %p534_p1 }
  0x15   :  { %p537_p4 = pnand %p536_p3, %p530_p0 }
  0x1a   :  { %491 = vmatmul.mubr.msk.bf16.gmra.mrb[8].mxu0 %vm142_vm0, %v523_v11  ;;  %499 = vmatmul.mubr.msk.bf16.gmra.mrb[8].mxu1 %vm142_vm0, %v523_v11 }
  0x1b   :  { %229 = vmatprep.mubr.bf16.mxu0 %v553_v2  ;;  %342 = vmatprep.mubr.bf16.mxu1 %v553_v2 }
  0x22   :  { %492 = vmatmul.mubr.msk.bf16.gmra.mrb[12].mxu0 %vm142_vm0, %v524_v12  ;;  %500 = vmatmul.mubr.msk.bf16.gmra.mrb[12].mxu1 %vm142_vm0, %v524_v12 }
  0x23   :  { %239 = vmatprep.mubr.bf16.mxu0 %v553_v2  ;;  %352 = vmatprep.mubr.bf16.mxu1 %v553_v2 }
  0x2a   :  { %493 = vmatmul.mubr.msk.bf16.gmra.mrb[16].mxu0 %vm142_vm0, %v525_v13  ;;  %501 = vmatmul.mubr.msk.bf16.gmra.mrb[16].mxu1 %vm142_vm0, %v525_v13 }
  0x2b   :  { %249 = vmatprep.mubr.bf16.mxu0 %v553_v2  ;;  %362 = vmatprep.mubr.bf16.mxu1 %v553_v2 }
  0x32   :  { %494 = vmatmul.mubr.msk.bf16.gmra.mrb[20].mxu0 %vm142_vm0, %v526_v14  ;;  %502 = vmatmul.mubr.msk.bf16.gmra.mrb[20].mxu1 %vm142_vm0, %v526_v14 }
  0x33   :  { %259 = vmatprep.mubr.bf16.mxu0 %v553_v2  ;;  %372 = vmatprep.mubr.bf16.mxu1 %v553_v2 }
  0x3a   :  { %495 = vmatmul.mubr.msk.bf16.gmra.mrb[24].mxu0 %vm142_vm0, %v527_v15  ;;  %503 = vmatmul.mubr.msk.bf16.gmra.mrb[24].mxu1 %vm142_vm0, %v527_v15 }
  0x3b   :  { %269 = vmatprep.mubr.bf16.mxu0 %v553_v2  ;;  %382 = vmatprep.mubr.bf16.mxu1 %v553_v2 }
  0x42   :  { %496 = vmatmul.mubr.msk.bf16.gmra.mrb[28].mxu0 %vm142_vm0, %v528_v16  ;;  %504 = vmatmul.mubr.msk.bf16.gmra.mrb[28].mxu1 %vm142_vm0, %v528_v16 }
  0xdd   :  { %v201_v28 = vpop.f32.mrb[0].mxu0  ;;  %v314_v29 = vpop.f32.mrb[0].mxu1 }
  0xde   :  { %v202_v30 = vadd.f32 %v201_v28, %v644_v24  ;;  %v315_v31 = vadd.f32 %v314_v29, %v646_v25  ;;  %v203_v32 = vpop.f32.mrb[1].mxu0  ;;  %v316_v33 = vpop.f32.mrb[1].mxu1 }
  0xdf   :  { %v204_v34 = vadd.f32 %v203_v32, %v648_v26  ;;  %v317_v35 = vadd.f32 %v316_v33, %v650_v27  ;;  %v205_v36 = vpop.f32.mrb[2].mxu0  ;;  %v318_v37 = vpop.f32.mrb[2].mxu1 }
  0xe0   :  { %393 = vst [vmem:[#allocation2] sm:$0xff] %v202_v30  ;;  %395 = vst [vmem:[#allocation2 + $0x10] sm:$0xff] %v315_v31  ;;  %v206_v38 = vadd.f32 %v205_v36, %v644_v24  ;;  %v319_v39 = vadd.f32 %v318_v37, %v646_v25  ;;  %v207_v40 = vpop.f32.mrb[3].mxu0  ;;  %v320_v41 = vpop.f32.mrb[3].mxu1 }
  0xe1   :  { %394 = vst [vmem:[#allocation2 + $0x8] sm:$0xff] %v204_v34  ;;  %396 = vst [vmem:[#allocation2 + $0x18] sm:$0xff] %v317_v35  ;;  %v208_v42 = vadd.f32 %v207_v40, %v648_v26  ;;  %v321_v43 = vadd.f32 %v320_v41, %v650_v27 }
  0xe2   :  { %397 = vst [vmem:[#allocation2 + $0x20] sm:$0xff] %v206_v38  ;;  %399 = vst [vmem:[#allocation2 + $0x30] sm:$0xff] %v319_v39 }
  0xe3   :  { %398 = vst [vmem:[#allocation2 + $0x28] sm:$0xff] %v208_v42  ;;  %400 = vst [vmem:[#allocation2 + $0x38] sm:$0xff] %v321_v43 }
  0xe5   :  { %v211_v44 = vpop.f32.mrb[4].mxu0  ;;  %v324_v45 = vpop.f32.mrb[4].mxu1 }
  0xe6   :  { %v212_v46 = vadd.f32 %v211_v44, %v644_v24  ;;  %v325_v47 = vadd.f32 %v324_v45, %v646_v25  ;;  %v213_v48 = vpop.f32.mrb[5].mxu0  ;;  %v326_v49 = vpop.f32.mrb[5].mxu1 }
  0xe7   :  { %v214_v50 = vadd.f32 %v213_v48, %v648_v26  ;;  %v327_v51 = vadd.f32 %v326_v49, %v650_v27  ;;  %v215_v52 = vpop.f32.mrb[6].mxu0  ;;  %v328_v53 = vpop.f32.mrb[6].mxu1 }
  0xe8   :  { %401 = vst [vmem:[#allocation2 + $0x40] sm:$0xff] %v212_v46  ;;  %403 = vst [vmem:[#allocation2 + $0x50] sm:$0xff] %v325_v47  ;;  %v216_v54 = vadd.f32 %v215_v52, %v644_v24  ;;  %v329_v55 = vadd.f32 %v328_v53, %v646_v25  ;;  %v217_v56 = vpop.f32.mrb[7].mxu0  ;;  %v330_v57 = vpop.f32.mrb[7].mxu1 }
  0xe9   :  { %402 = vst [vmem:[#allocation2 + $0x48] sm:$0xff] %v214_v50  ;;  %404 = vst [vmem:[#allocation2 + $0x58] sm:$0xff] %v327_v51  ;;  %v218_v58 = vadd.f32 %v217_v56, %v648_v26  ;;  %v331_v59 = vadd.f32 %v330_v57, %v650_v27 }
  0xea   :  { %405 = vst [vmem:[#allocation2 + $0x60] sm:$0xff] %v216_v54  ;;  %407 = vst [vmem:[#allocation2 + $0x70] sm:$0xff] %v329_v55 }
  0xeb   :  { %406 = vst [vmem:[#allocation2 + $0x68] sm:$0xff] %v218_v58  ;;  %408 = vst [vmem:[#allocation2 + $0x78] sm:$0xff] %v331_v59 }
  0xed   :  { %v221_v60 = vpop.f32.mrb[8].mxu0  ;;  %v334_v61 = vpop.f32.mrb[8].mxu1 }
  0xee   :  { %v222_v62 = vadd.f32 %v221_v60, %v644_v24  ;;  %v335_v63 = vadd.f32 %v334_v61, %v646_v25  ;;  %v223_v0 = vpop.f32.mrb[9].mxu0  ;;  %v336_v1 = vpop.f32.mrb[9].mxu1 }
  0xef   :  { %v224_v2 = vadd.f32 %v223_v0, %v648_v26  ;;  %v337_v3 = vadd.f32 %v336_v1, %v650_v27  ;;  %v225_v4 = vpop.f32.mrb[10].mxu0  ;;  %v338_v5 = vpop.f32.mrb[10].mxu1 }
  0xf0   :  { %409 = vst [vmem:[#allocation2 + $0x80] sm:$0xff] %v222_v62  ;;  %411 = vst [vmem:[#allocation2 + $0x90] sm:$0xff] %v335_v63  ;;  %v226_v6 = vadd.f32 %v225_v4, %v644_v24  ;;  %v339_v7 = vadd.f32 %v338_v5, %v646_v25  ;;  %v227_v8 = vpop.f32.mrb[11].mxu0  ;;  %v340_v9 = vpop.f32.mrb[11].mxu1 }
  0xf1   :  { %410 = vst [vmem:[#allocation2 + $0x88] sm:$0xff] %v224_v2  ;;  %412 = vst [vmem:[#allocation2 + $0x98] sm:$0xff] %v337_v3  ;;  %v228_v10 = vadd.f32 %v227_v8, %v648_v26  ;;  %v341_v11 = vadd.f32 %v340_v9, %v650_v27 }
  0xf2   :  { %413 = vst [vmem:[#allocation2 + $0xa0] sm:$0xff] %v226_v6  ;;  %415 = vst [vmem:[#allocation2 + $0xb0] sm:$0xff] %v339_v7 }
  0xf3   :  { %414 = vst [vmem:[#allocation2 + $0xa8] sm:$0xff] %v228_v10  ;;  %416 = vst [vmem:[#allocation2 + $0xb8] sm:$0xff] %v341_v11 }
  0xf5   :  { %v231_v12 = vpop.f32.mrb[12].mxu0  ;;  %v344_v13 = vpop.f32.mrb[12].mxu1 }
  0xf6   :  { %v232_v14 = vadd.f32 %v231_v12, %v644_v24  ;;  %v345_v15 = vadd.f32 %v344_v13, %v646_v25  ;;  %v233_v16 = vpop.f32.mrb[13].mxu0  ;;  %v346_v17 = vpop.f32.mrb[13].mxu1 }
  0xf7   :  { %v234_v18 = vadd.f32 %v233_v16, %v648_v26  ;;  %v347_v19 = vadd.f32 %v346_v17, %v650_v27  ;;  %v235_v20 = vpop.f32.mrb[14].mxu0  ;;  %v348_v21 = vpop.f32.mrb[14].mxu1 }
  0xf8   :  { %417 = vst [vmem:[#allocation2 + $0xc0] sm:$0xff] %v232_v14  ;;  %419 = vst [vmem:[#allocation2 + $0xd0] sm:$0xff] %v345_v15  ;;  %v236_v22 = vadd.f32 %v235_v20, %v644_v24  ;;  %v349_v23 = vadd.f32 %v348_v21, %v646_v25  ;;  %v237_v28 = vpop.f32.mrb[15].mxu0  ;;  %v350_v29 = vpop.f32.mrb[15].mxu1 }
  0xf9   :  { %418 = vst [vmem:[#allocation2 + $0xc8] sm:$0xff] %v234_v18  ;;  %420 = vst [vmem:[#allocation2 + $0xd8] sm:$0xff] %v347_v19  ;;  %v238_v30 = vadd.f32 %v237_v28, %v648_v26  ;;  %v351_v31 = vadd.f32 %v350_v29, %v650_v27 }
  0xfa   :  { %421 = vst [vmem:[#allocation2 + $0xe0] sm:$0xff] %v236_v22  ;;  %423 = vst [vmem:[#allocation2 + $0xf0] sm:$0xff] %v349_v23 }
  0xfb   :  { %422 = vst [vmem:[#allocation2 + $0xe8] sm:$0xff] %v238_v30  ;;  %424 = vst [vmem:[#allocation2 + $0xf8] sm:$0xff] %v351_v31 }
  0xfd   :  { %v241_v32 = vpop.f32.mrb[16].mxu0  ;;  %v354_v33 = vpop.f32.mrb[16].mxu1 }
  0xfe   :  { %v242_v34 = vadd.f32 %v241_v32, %v644_v24  ;;  %v355_v35 = vadd.f32 %v354_v33, %v646_v25  ;;  %v243_v36 = vpop.f32.mrb[17].mxu0  ;;  %v356_v37 = vpop.f32.mrb[17].mxu1 }
  0xff   :  { %v244_v38 = vadd.f32 %v243_v36, %v648_v26  ;;  %v357_v39 = vadd.f32 %v356_v37, %v650_v27  ;;  %v245_v40 = vpop.f32.mrb[18].mxu0  ;;  %v358_v41 = vpop.f32.mrb[18].mxu1 }
 0x100   :  { %425 = vst [vmem:[#allocation2 + $0x100] sm:$0xff] %v242_v34  ;;  %427 = vst [vmem:[#allocation2 + $0x110] sm:$0xff] %v355_v35  ;;  %v246_v42 = vadd.f32 %v245_v40, %v644_v24  ;;  %v359_v43 = vadd.f32 %v358_v41, %v646_v25  ;;  %v247_v44 = vpop.f32.mrb[19].mxu0  ;;  %v360_v45 = vpop.f32.mrb[19].mxu1 }
 0x101   :  { %426 = vst [vmem:[#allocation2 + $0x108] sm:$0xff] %v244_v38  ;;  %428 = vst [vmem:[#allocation2 + $0x118] sm:$0xff] %v357_v39  ;;  %v248_v46 = vadd.f32 %v247_v44, %v648_v26  ;;  %v361_v47 = vadd.f32 %v360_v45, %v650_v27 }
 0x102   :  { %429 = vst [vmem:[#allocation2 + $0x120] sm:$0xff] %v246_v42  ;;  %431 = vst [vmem:[#allocation2 + $0x130] sm:$0xff] %v359_v43 }
 0x103   :  { %430 = vst [vmem:[#allocation2 + $0x128] sm:$0xff] %v248_v46  ;;  %432 = vst [vmem:[#allocation2 + $0x138] sm:$0xff] %v361_v47 }
 0x105   :  { %v251_v48 = vpop.f32.mrb[20].mxu0  ;;  %v364_v49 = vpop.f32.mrb[20].mxu1 }
 0x106   :  { %v252_v50 = vadd.f32 %v251_v48, %v644_v24  ;;  %v365_v51 = vadd.f32 %v364_v49, %v646_v25  ;;  %v253_v52 = vpop.f32.mrb[21].mxu0  ;;  %v366_v53 = vpop.f32.mrb[21].mxu1 }
 0x107   :  { %v254_v54 = vadd.f32 %v253_v52, %v648_v26  ;;  %v367_v55 = vadd.f32 %v366_v53, %v650_v27  ;;  %v255_v56 = vpop.f32.mrb[22].mxu0  ;;  %v368_v57 = vpop.f32.mrb[22].mxu1 }
 0x108   :  { %433 = vst [vmem:[#allocation2 + $0x140] sm:$0xff] %v252_v50  ;;  %435 = vst [vmem:[#allocation2 + $0x150] sm:$0xff] %v365_v51  ;;  %v256_v58 = vadd.f32 %v255_v56, %v644_v24  ;;  %v369_v59 = vadd.f32 %v368_v57, %v646_v25  ;;  %v257_v60 = vpop.f32.mrb[23].mxu0  ;;  %v370_v61 = vpop.f32.mrb[23].mxu1 }
 0x109   :  { %434 = vst [vmem:[#allocation2 + $0x148] sm:$0xff] %v254_v54  ;;  %436 = vst [vmem:[#allocation2 + $0x158] sm:$0xff] %v367_v55  ;;  %v258_v62 = vadd.f32 %v257_v60, %v648_v26  ;;  %v371_v63 = vadd.f32 %v370_v61, %v650_v27 }
 0x10a   :  { %437 = vst [vmem:[#allocation2 + $0x160] sm:$0xff] %v256_v58  ;;  %439 = vst [vmem:[#allocation2 + $0x170] sm:$0xff] %v369_v59 }
 0x10b   :  { %438 = vst [vmem:[#allocation2 + $0x168] sm:$0xff] %v258_v62  ;;  %440 = vst [vmem:[#allocation2 + $0x178] sm:$0xff] %v371_v63 }
 0x10d   :  { %v261_v0 = vpop.f32.mrb[24].mxu0  ;;  %v374_v1 = vpop.f32.mrb[24].mxu1 }
 0x10e   :  { %v262_v2 = vadd.f32 %v261_v0, %v644_v24  ;;  %v375_v3 = vadd.f32 %v374_v1, %v646_v25  ;;  %v263_v4 = vpop.f32.mrb[25].mxu0  ;;  %v376_v5 = vpop.f32.mrb[25].mxu1 }
 0x10f   :  { %v264_v6 = vadd.f32 %v263_v4, %v648_v26  ;;  %v377_v7 = vadd.f32 %v376_v5, %v650_v27  ;;  %v265_v8 = vpop.f32.mrb[26].mxu0  ;;  %v378_v9 = vpop.f32.mrb[26].mxu1 }
 0x110   :  { %441 = vst [vmem:[#allocation2 + $0x180] sm:$0xff] %v262_v2  ;;  %443 = vst [vmem:[#allocation2 + $0x190] sm:$0xff] %v375_v3  ;;  %v266_v10 = vadd.f32 %v265_v8, %v644_v24  ;;  %v379_v11 = vadd.f32 %v378_v9, %v646_v25  ;;  %v267_v12 = vpop.f32.mrb[27].mxu0  ;;  %v380_v13 = vpop.f32.mrb[27].mxu1 }
 0x111   :  { %442 = vst [vmem:[#allocation2 + $0x188] sm:$0xff] %v264_v6  ;;  %444 = vst [vmem:[#allocation2 + $0x198] sm:$0xff] %v377_v7  ;;  %v268_v14 = vadd.f32 %v267_v12, %v648_v26  ;;  %v381_v15 = vadd.f32 %v380_v13, %v650_v27 }
 0x112   :  { %445 = vst [vmem:[#allocation2 + $0x1a0] sm:$0xff] %v266_v10  ;;  %447 = vst [vmem:[#allocation2 + $0x1b0] sm:$0xff] %v379_v11 }
 0x113   :  { %446 = vst [vmem:[#allocation2 + $0x1a8] sm:$0xff] %v268_v14  ;;  %448 = vst [vmem:[#allocation2 + $0x1b8] sm:$0xff] %v381_v15 }
 0x115   :  { %v271_v16 = vpop.f32.mrb[28].mxu0  ;;  %v384_v17 = vpop.f32.mrb[28].mxu1 }
 0x116   :  { %v272_v18 = vadd.f32 %v271_v16, %v644_v24  ;;  %v385_v19 = vadd.f32 %v384_v17, %v646_v25  ;;  %v273_v20 = vpop.f32.mrb[29].mxu0  ;;  %v386_v21 = vpop.f32.mrb[29].mxu1 }
 0x117   :  { %v274_v22 = vadd.f32 %v273_v20, %v648_v26  ;;  %v387_v23 = vadd.f32 %v386_v21, %v650_v27  ;;  %v275_v28 = vpop.f32.mrb[30].mxu0  ;;  %v388_v29 = vpop.f32.mrb[30].mxu1 }
 0x118   :  { %449 = vst [vmem:[#allocation2 + $0x1c0] sm:$0xff] %v272_v18  ;;  %451 = vst [vmem:[#allocation2 + $0x1d0] sm:$0xff] %v385_v19  ;;  %v276_v30 = vadd.f32 %v275_v28, %v644_v24  ;;  %v389_v31 = vadd.f32 %v388_v29, %v646_v25  ;;  %v277_v32 = vpop.f32.mrb[31].mxu0  ;;  %v390_v33 = vpop.f32.mrb[31].mxu1 }
 0x119   :  { %450 = vst [vmem:[#allocation2 + $0x1c8] sm:$0xff] %v274_v22  ;;  %452 = vst [vmem:[#allocation2 + $0x1d8] sm:$0xff] %v387_v23  ;;  %v278_v34 = vadd.f32 %v277_v32, %v648_v26  ;;  %v391_v35 = vadd.f32 %v390_v33, %v650_v27 }
 0x11a   :  { %453 = vst [vmem:[#allocation2 + $0x1e0] sm:$0xff] %v276_v30  ;;  %455 = vst [vmem:[#allocation2 + $0x1f0] sm:$0xff] %v389_v31 }
 0x11b   :  { %454 = vst [vmem:[#allocation2 + $0x1e8] sm:$0xff] %v278_v34  ;;  %456 = vst [vmem:[#allocation2 + $0x1f8] sm:$0xff] %v391_v35 }
 0x11c   :  { %540 = shalt.err (!%p537_p4)
}
 0x11d   :  { %s541_s21 = scalar_lea.hbm %s731_s3, 8192 }
 0x11e   :  { %p542_p5 = scmp.ne.s32.totalorder %s731_s3, %s541_s21  ;;  %p545_p6 = scmp.lt.u32.totalorder %s541_s21, %s731_s3 }
 0x120   :  { %p547_p7 = pnand %p545_p6, %p542_p5 }
 0x122   :  { %550 = shalt.err (!%p547_p7)
}
 0x123   :  { %s555_s26 = smov 512   ;;  %s556_s27 = smov 32  }
 0x124   :  { %468 = dma.vmem_to_hbm [thread:$0]  %s463_s2, 8192, %s731_s3, [#allocation3], %s555_s26, %s555_s26, %s556_s27  }
 0x125   :  { %551 = dma.done.wait [#allocation3], 8192  }
 0x126   :  { %552 = vsyncadd [#allocation3], 4294959104 }
 0x127   :  { %472 = vsyncpa [#allocation3], 1 }

</bundles_post_ra>
